<compile_context>
chip_gen: v7x
topology: tpu7x:2x2x1
jax: 0.10.0
libtpu: 0.0.40
codegen_flags: <defaults>
</compile_context>

<pallas_src>
import jax
import jax.numpy as jnp
from jax.experimental import pallas as pl
from jax.experimental.pallas import tpu as pltpu

OUT_PAD = 128  # final layer padded to a full lane width -> unmasked vst


def _round_up(x, m):
    return (x + m - 1) // m * m


def mlp_kernel(x_ref,
               w1, b1, w2, b2, w3, b3, w4, b4, w5, b5, w6, b6, w7, b7,
               out_ref):
    """One batch tile of the whole MLP. Weights are VMEM-resident (constant
    index_map); only the x / out tiles stream through the BlockSpec pipeline."""
    compute_dtype = w1.dtype

    def dense(h, w_ref, b_ref, relu=True):
        # MXU matmul with f32 accumulation; bias add + ReLU on the VPU.
        y = jnp.dot(h, w_ref[...], preferred_element_type=jnp.float32)
        y = y + b_ref[...].astype(jnp.float32)
        if relu:
            y = jnp.maximum(y, 0.0)
        return y.astype(compute_dtype)

    # Cast happens per-tile in VMEM (cheaper than a wrapper-side HBM pass).
    h = x_ref[...].astype(compute_dtype)
    h = dense(h, w1, b1)          # F    -> F/2  (+ dropout id)
    h = dense(h, w2, b2)          # F/2  -> F/4  (+ dropout id)
    h = dense(h, w3, b3)          # F/4  -> F/4  (+ dropout id)
    h = dense(h, w4, b4)          # F/4  -> F/4  (+ dropout id)
    h = dense(h, w5, b5)          # F/4  -> F/8
    h = dense(h, w6, b6)          # F/8  -> F/8  (+ dropout id)
    # Final linear, no activation; w7/b7 already zero-padded to OUT_PAD lanes
    # so this store is lane-dense.
    y = jnp.dot(h, w7[...], preferred_element_type=jnp.float32)
    y = y + b7[...].astype(jnp.float32)
    out_ref[...] = y.astype(out_ref.dtype)


def hw2_part2_forward(x, params, *, block_b=None, compute_dtype=jnp.float32):
    """x: [B, F] float32. params: list of (w_t, b) with w_t shaped [in, out]."""
    B, F = x.shape
    out_dim = params[-1][0].shape[1]

    # ---- batch tile: fill the MXU M dimension when the batch allows it ----
    if block_b is None:
        if B >= 256:
            block_b = 256
        elif B >= 128:
            block_b = 128
        else:
            block_b = _round_up(max(B, 8), 8)
    b_pad = _round_up(B, block_b)

    x_p = x
    if b_pad != B:
        x_p = jnp.pad(x_p, ((0, b_pad - B), (0, 0)))

    # ---- flatten params ([in,out] weights, [1,out] biases); pad the last
    #      layer to OUT_PAD lanes so the kernel output slab is lane-dense ----
    flat = []
    for li, (w_t, b) in enumerate(params):
        w_c = w_t.astype(compute_dtype)
        b_c = b.reshape(1, -1).astype(jnp.float32)
        if li == len(params) - 1:
            w_c = jnp.pad(w_c, ((0, 0), (0, OUT_PAD - w_c.shape[1])))
            b_c = jnp.pad(b_c, ((0, 0), (0, OUT_PAD - b_c.shape[1])))
        flat.extend((w_c, b_c))

    grid = (b_pad // block_b,)

    x_spec = pl.BlockSpec((block_b, F), lambda i: (i, 0))
    # Full-array blocks with a constant index_map -> weights stay resident,
    # no re-DMA per grid step.
    param_specs = [pl.BlockSpec(a.shape, lambda i: (0, 0)) for a in flat]
    out_spec = pl.BlockSpec((block_b, OUT_PAD), lambda i: (i, 0))

    # ---- advisory cost estimate ----
    flops = 2 * b_pad * sum(w.shape[0] * w.shape[1] for w, _ in params)
    param_bytes = sum(a.size * a.dtype.itemsize for a in flat)
    bytes_accessed = (x_p.size * x_p.dtype.itemsize
                      + param_bytes
                      + b_pad * OUT_PAD * 4)

    # ---- explicit VMEM budget (tile-padded, conservatively 2x-buffered),
    #      capped below v7x's 64 MiB per-TC physical limit ----
    def _tile_bytes(shape, dtype):
        r = _round_up(shape[-2], 8) if len(shape) >= 2 else 8
        c = _round_up(shape[-1], 128)
        return r * c * jnp.dtype(dtype).itemsize

    vmem_bytes = (2 * sum(_tile_bytes(a.shape, a.dtype) for a in flat)     # resident params
                  + 2 * _tile_bytes((block_b, F), x_p.dtype)               # double-buffered x
                  + 2 * _tile_bytes((block_b, OUT_PAD), jnp.float32)       # double-buffered out
                  + (4 << 20))                                             # activation headroom
    vmem_bytes = int(min(max(vmem_bytes, 8 << 20), 60 << 20))

    out_padded = pl.pallas_call(
        mlp_kernel,
        out_shape=jax.ShapeDtypeStruct((b_pad, OUT_PAD), jnp.float32),
        grid_spec=pltpu.PrefetchScalarGridSpec(
            num_scalar_prefetch=0,
            grid=grid,
            in_specs=[x_spec] + param_specs,
            out_specs=out_spec,
        ),
        compiler_params=pltpu.CompilerParams(
            dimension_semantics=("parallel",),   # batch tiles shard across TCs (v7x)
            vmem_limit_bytes=vmem_bytes,
        ),
        cost_estimate=pl.CostEstimate(
            flops=int(flops),
            transcendentals=0,
            bytes_accessed=int(bytes_accessed),
        ),
    )(x_p, *flat)

    return out_padded[:B, :out_dim]


def make_params(key, input_size, output_size=2):
    """Deterministic init mimicking nn.Linear's uniform(-1/sqrt(in), 1/sqrt(in))."""
    dims = [
        (input_size, input_size // 2),
        (input_size // 2, input_size // 4),
        (input_size // 4, input_size // 4),
        (input_size // 4, input_size // 4),
        (input_size // 4, input_size // 8),
        (input_size // 8, input_size // 8),
        (input_size // 8, output_size),
    ]
    params = []
    for (fan_in, fan_out) in dims:
        key, kw, kb = jax.random.split(key, 3)
        bound = 1.0 / jnp.sqrt(jnp.float32(fan_in))
        # Stored directly as [in, out] (i.e. PyTorch weight transposed).
        w_t = jax.random.uniform(kw, (fan_in, fan_out), jnp.float32, -bound, bound)
        b = jax.random.uniform(kb, (fan_out,), jnp.float32, -bound, bound)
        params.append((w_t, b))
    return params


def reference_forward(x, params):
    h = x
    n = len(params)
    for i, (w_t, b) in enumerate(params):
        h = h @ w_t + b
        if i < n - 1:
            h = jnp.maximum(h, 0.0)
    return h


if __name__ == "__main__":
    INPUT_SIZE = 256   # must be divisible by 8 per the module's /2,/4,/8 splits
    BATCH = 16         # 2 batch tiles of 8 -> exercises the grid / parallel axis

    key = jax.random.PRNGKey(0)
    key, kx = jax.random.split(key)
    x = jax.random.normal(kx, (BATCH, INPUT_SIZE), dtype=jnp.float32)

    params = make_params(key, INPUT_SIZE, output_size=2)
    ref = reference_forward(x, params)

    # f32 path: strict correctness check.
    out = hw2_part2_forward(x, params, block_b=8)
    out = jax.block_until_ready(out)
    assert out.shape == (BATCH, 2), out.shape
    assert jnp.allclose(out, ref, atol=1e-4, rtol=1e-4), "f32 mismatch vs JAX reference"

    # bf16 operand path (v6e/v7x perf mode): f32 accumulation, loose tolerance.
    out_bf16 = hw2_part2_forward(x, params, block_b=8, compute_dtype=jnp.bfloat16)
    out_bf16 = jax.block_until_ready(out_bf16)
    assert out_bf16.shape == (BATCH, 2), out_bf16.shape
    assert bool(jnp.all(jnp.isfinite(out_bf16))), "bf16 output not finite"
    assert float(jnp.max(jnp.abs(out_bf16 - ref))) < 0.25, "bf16 mismatch vs JAX reference"

    print("KERNEL_OK")
</pallas_src>

<mosaic_0001>
module attributes {stable_mosaic.version = 11 : i64} {
  func.func @mlp_kernel(%arg0: i32, %arg1: memref<8x256xf32, #tpu.memory_space<vmem>>, %arg2: memref<256x128xf32, #tpu.memory_space<vmem>>, %arg3: memref<1x128xf32, #tpu.memory_space<vmem>>, %arg4: memref<128x64xf32, #tpu.memory_space<vmem>>, %arg5: memref<1x64xf32, #tpu.memory_space<vmem>>, %arg6: memref<64x64xf32, #tpu.memory_space<vmem>>, %arg7: memref<1x64xf32, #tpu.memory_space<vmem>>, %arg8: memref<64x64xf32, #tpu.memory_space<vmem>>, %arg9: memref<1x64xf32, #tpu.memory_space<vmem>>, %arg10: memref<64x32xf32, #tpu.memory_space<vmem>>, %arg11: memref<1x32xf32, #tpu.memory_space<vmem>>, %arg12: memref<32x32xf32, #tpu.memory_space<vmem>>, %arg13: memref<1x32xf32, #tpu.memory_space<vmem>>, %arg14: memref<32x128xf32, #tpu.memory_space<vmem>>, %arg15: memref<1x128xf32, #tpu.memory_space<vmem>>, %arg16: memref<8x128xf32, #tpu.memory_space<vmem>>) attributes {dimension_semantics = [#tpu.dimension_semantics<parallel>], iteration_bounds = array<i64: 2>, scalar_prefetch = 0 : i64, scratch_operands = 0 : i64, tpu.core_type = #tpu.core_type<tc>, window_params = [{transform_indices = @transform_0, window_bounds = array<i64: 8, 256>}, {pipeline_mode = #tpu.pipeline_mode<synchronous>, transform_indices = @transform_1, window_bounds = array<i64: 256, 128>}, {pipeline_mode = #tpu.pipeline_mode<synchronous>, transform_indices = @transform_2, window_bounds = array<i64: 1, 128>}, {pipeline_mode = #tpu.pipeline_mode<synchronous>, transform_indices = @transform_3, window_bounds = array<i64: 128, 64>}, {pipeline_mode = #tpu.pipeline_mode<synchronous>, transform_indices = @transform_4, window_bounds = array<i64: 1, 64>}, {pipeline_mode = #tpu.pipeline_mode<synchronous>, transform_indices = @transform_5, window_bounds = array<i64: 64, 64>}, {pipeline_mode = #tpu.pipeline_mode<synchronous>, transform_indices = @transform_6, window_bounds = array<i64: 1, 64>}, {pipeline_mode = #tpu.pipeline_mode<synchronous>, transform_indices = @transform_7, window_bounds = array<i64: 64, 64>}, {pipeline_mode = #tpu.pipeline_mode<synchronous>, transform_indices = @transform_8, window_bounds = array<i64: 1, 64>}, {pipeline_mode = #tpu.pipeline_mode<synchronous>, transform_indices = @transform_9, window_bounds = array<i64: 64, 32>}, {pipeline_mode = #tpu.pipeline_mode<synchronous>, transform_indices = @transform_10, window_bounds = array<i64: 1, 32>}, {pipeline_mode = #tpu.pipeline_mode<synchronous>, transform_indices = @transform_11, window_bounds = array<i64: 32, 32>}, {pipeline_mode = #tpu.pipeline_mode<synchronous>, transform_indices = @transform_12, window_bounds = array<i64: 1, 32>}, {pipeline_mode = #tpu.pipeline_mode<synchronous>, transform_indices = @transform_13, window_bounds = array<i64: 32, 128>}, {pipeline_mode = #tpu.pipeline_mode<synchronous>, transform_indices = @transform_14, window_bounds = array<i64: 1, 128>}, {transform_indices = @transform_15, window_bounds = array<i64: 8, 128>}]} {
    %c0 = arith.constant 0 : index
    %c0_0 = arith.constant 0 : index
    %0 = vector.load %arg1[%c0, %c0_0] : memref<8x256xf32, #tpu.memory_space<vmem>>, vector<8x256xf32>
    %c0_1 = arith.constant 0 : index
    %c0_2 = arith.constant 0 : index
    %1 = vector.load %arg2[%c0_1, %c0_2] : memref<256x128xf32, #tpu.memory_space<vmem>>, vector<256x128xf32>
    %cst = arith.constant dense<0.000000e+00> : vector<8x128xf32>
    %2 = tpu.matmul %0, %1, %cst {dimension_numbers = #tpu.dot_dimension_numbers<[1], [0], [0], [1], [0, 0, 1, 1], [], []>} : vector<8x256xf32>, vector<256x128xf32>, vector<8x128xf32> -> vector<8x128xf32>
    %c0_3 = arith.constant 0 : index
    %c0_4 = arith.constant 0 : index
    %3 = vector.load %arg3[%c0_3, %c0_4] : memref<1x128xf32, #tpu.memory_space<vmem>>, vector<1x128xf32>
    %4 = vector.broadcast %3 : vector<1x128xf32> to vector<8x128xf32>
    %5 = arith.addf %2, %4 : vector<8x128xf32>
    %cst_5 = arith.constant 0.000000e+00 : f32
    %6 = vector.broadcast %cst_5 : f32 to vector<8x128xf32>
    %7 = arith.maximumf %5, %6 : vector<8x128xf32>
    %c0_6 = arith.constant 0 : index
    %c0_7 = arith.constant 0 : index
    %8 = vector.load %arg4[%c0_6, %c0_7] : memref<128x64xf32, #tpu.memory_space<vmem>>, vector<128x64xf32>
    %cst_8 = arith.constant dense<0.000000e+00> : vector<8x64xf32>
    %9 = tpu.matmul %7, %8, %cst_8 {dimension_numbers = #tpu.dot_dimension_numbers<[1], [0], [0], [1], [0, 0, 1, 1], [], []>} : vector<8x128xf32>, vector<128x64xf32>, vector<8x64xf32> -> vector<8x64xf32>
    %c0_9 = arith.constant 0 : index
    %c0_10 = arith.constant 0 : index
    %10 = vector.load %arg5[%c0_9, %c0_10] : memref<1x64xf32, #tpu.memory_space<vmem>>, vector<1x64xf32>
    %11 = vector.broadcast %10 : vector<1x64xf32> to vector<8x64xf32>
    %12 = arith.addf %9, %11 : vector<8x64xf32>
    %cst_11 = arith.constant 0.000000e+00 : f32
    %13 = vector.broadcast %cst_11 : f32 to vector<8x64xf32>
    %14 = arith.maximumf %12, %13 : vector<8x64xf32>
    %c0_12 = arith.constant 0 : index
    %c0_13 = arith.constant 0 : index
    %15 = vector.load %arg6[%c0_12, %c0_13] : memref<64x64xf32, #tpu.memory_space<vmem>>, vector<64x64xf32>
    %cst_14 = arith.constant dense<0.000000e+00> : vector<8x64xf32>
    %16 = tpu.matmul %14, %15, %cst_14 {dimension_numbers = #tpu.dot_dimension_numbers<[1], [0], [0], [1], [0, 0, 1, 1], [], []>} : vector<8x64xf32>, vector<64x64xf32>, vector<8x64xf32> -> vector<8x64xf32>
    %c0_15 = arith.constant 0 : index
    %c0_16 = arith.constant 0 : index
    %17 = vector.load %arg7[%c0_15, %c0_16] : memref<1x64xf32, #tpu.memory_space<vmem>>, vector<1x64xf32>
    %18 = vector.broadcast %17 : vector<1x64xf32> to vector<8x64xf32>
    %19 = arith.addf %16, %18 : vector<8x64xf32>
    %cst_17 = arith.constant 0.000000e+00 : f32
    %20 = vector.broadcast %cst_17 : f32 to vector<8x64xf32>
    %21 = arith.maximumf %19, %20 : vector<8x64xf32>
    %c0_18 = arith.constant 0 : index
    %c0_19 = arith.constant 0 : index
    %22 = vector.load %arg8[%c0_18, %c0_19] : memref<64x64xf32, #tpu.memory_space<vmem>>, vector<64x64xf32>
    %cst_20 = arith.constant dense<0.000000e+00> : vector<8x64xf32>
    %23 = tpu.matmul %21, %22, %cst_20 {dimension_numbers = #tpu.dot_dimension_numbers<[1], [0], [0], [1], [0, 0, 1, 1], [], []>} : vector<8x64xf32>, vector<64x64xf32>, vector<8x64xf32> -> vector<8x64xf32>
    %c0_21 = arith.constant 0 : index
    %c0_22 = arith.constant 0 : index
    %24 = vector.load %arg9[%c0_21, %c0_22] : memref<1x64xf32, #tpu.memory_space<vmem>>, vector<1x64xf32>
    %25 = vector.broadcast %24 : vector<1x64xf32> to vector<8x64xf32>
    %26 = arith.addf %23, %25 : vector<8x64xf32>
    %cst_23 = arith.constant 0.000000e+00 : f32
    %27 = vector.broadcast %cst_23 : f32 to vector<8x64xf32>
    %28 = arith.maximumf %26, %27 : vector<8x64xf32>
    %c0_24 = arith.constant 0 : index
    %c0_25 = arith.constant 0 : index
    %29 = vector.load %arg10[%c0_24, %c0_25] : memref<64x32xf32, #tpu.memory_space<vmem>>, vector<64x32xf32>
    %cst_26 = arith.constant dense<0.000000e+00> : vector<8x32xf32>
    %30 = tpu.matmul %28, %29, %cst_26 {dimension_numbers = #tpu.dot_dimension_numbers<[1], [0], [0], [1], [0, 0, 1, 1], [], []>} : vector<8x64xf32>, vector<64x32xf32>, vector<8x32xf32> -> vector<8x32xf32>
    %c0_27 = arith.constant 0 : index
    %c0_28 = arith.constant 0 : index
    %31 = vector.load %arg11[%c0_27, %c0_28] : memref<1x32xf32, #tpu.memory_space<vmem>>, vector<1x32xf32>
    %32 = vector.broadcast %31 : vector<1x32xf32> to vector<8x32xf32>
    %33 = arith.addf %30, %32 : vector<8x32xf32>
    %cst_29 = arith.constant 0.000000e+00 : f32
    %34 = vector.broadcast %cst_29 : f32 to vector<8x32xf32>
    %35 = arith.maximumf %33, %34 : vector<8x32xf32>
    %c0_30 = arith.constant 0 : index
    %c0_31 = arith.constant 0 : index
    %36 = vector.load %arg12[%c0_30, %c0_31] : memref<32x32xf32, #tpu.memory_space<vmem>>, vector<32x32xf32>
    %cst_32 = arith.constant dense<0.000000e+00> : vector<8x32xf32>
    %37 = tpu.matmul %35, %36, %cst_32 {dimension_numbers = #tpu.dot_dimension_numbers<[1], [0], [0], [1], [0, 0, 1, 1], [], []>} : vector<8x32xf32>, vector<32x32xf32>, vector<8x32xf32> -> vector<8x32xf32>
    %c0_33 = arith.constant 0 : index
    %c0_34 = arith.constant 0 : index
    %38 = vector.load %arg13[%c0_33, %c0_34] : memref<1x32xf32, #tpu.memory_space<vmem>>, vector<1x32xf32>
    %39 = vector.broadcast %38 : vector<1x32xf32> to vector<8x32xf32>
    %40 = arith.addf %37, %39 : vector<8x32xf32>
    %cst_35 = arith.constant 0.000000e+00 : f32
    %41 = vector.broadcast %cst_35 : f32 to vector<8x32xf32>
    %42 = arith.maximumf %40, %41 : vector<8x32xf32>
    %c0_36 = arith.constant 0 : index
    %c0_37 = arith.constant 0 : index
    %43 = vector.load %arg14[%c0_36, %c0_37] : memref<32x128xf32, #tpu.memory_space<vmem>>, vector<32x128xf32>
    %cst_38 = arith.constant dense<0.000000e+00> : vector<8x128xf32>
    %44 = tpu.matmul %42, %43, %cst_38 {dimension_numbers = #tpu.dot_dimension_numbers<[1], [0], [0], [1], [0, 0, 1, 1], [], []>} : vector<8x32xf32>, vector<32x128xf32>, vector<8x128xf32> -> vector<8x128xf32>
    %c0_39 = arith.constant 0 : index
    %c0_40 = arith.constant 0 : index
    %45 = vector.load %arg15[%c0_39, %c0_40] : memref<1x128xf32, #tpu.memory_space<vmem>>, vector<1x128xf32>
    %46 = vector.broadcast %45 : vector<1x128xf32> to vector<8x128xf32>
    %47 = arith.addf %44, %46 : vector<8x128xf32>
    %c0_41 = arith.constant 0 : index
    %c0_42 = arith.constant 0 : index
    %48 = vector.load %arg16[%c0_41, %c0_42] : memref<8x128xf32, #tpu.memory_space<vmem>>, vector<8x128xf32>
    tpu.vector_store %arg16[%c0_41, %c0_42], %47 {strides = array<i32>} : memref<8x128xf32, #tpu.memory_space<vmem>>, vector<8x128xf32>,
    return
  }
  func.func @transform_0(%arg0: i32) -> (i32, i32) {
    %c0_i32 = arith.constant 0 : i32
    %c0_i32_0 = arith.constant 0 : i32
    return %arg0, %c0_i32 : i32, i32
  }
  func.func @transform_1(%arg0: i32) -> (i32, i32) {
    %c0_i32 = arith.constant 0 : i32
    %c0_i32_0 = arith.constant 0 : i32
    %c0_i32_1 = arith.constant 0 : i32
    return %c0_i32, %c0_i32_0 : i32, i32
  }
  func.func @transform_2(%arg0: i32) -> (i32, i32) {
    %c0_i32 = arith.constant 0 : i32
    %c0_i32_0 = arith.constant 0 : i32
    %c0_i32_1 = arith.constant 0 : i32
    return %c0_i32, %c0_i32_0 : i32, i32
  }
  func.func @transform_3(%arg0: i32) -> (i32, i32) {
    %c0_i32 = arith.constant 0 : i32
    %c0_i32_0 = arith.constant 0 : i32
    %c0_i32_1 = arith.constant 0 : i32
    return %c0_i32, %c0_i32_0 : i32, i32
  }
  func.func @transform_4(%arg0: i32) -> (i32, i32) {
    %c0_i32 = arith.constant 0 : i32
    %c0_i32_0 = arith.constant 0 : i32
    %c0_i32_1 = arith.constant 0 : i32
    return %c0_i32, %c0_i32_0 : i32, i32
  }
  func.func @transform_5(%arg0: i32) -> (i32, i32) {
    %c0_i32 = arith.constant 0 : i32
    %c0_i32_0 = arith.constant 0 : i32
    %c0_i32_1 = arith.constant 0 : i32
    return %c0_i32, %c0_i32_0 : i32, i32
  }
  func.func @transform_6(%arg0: i32) -> (i32, i32) {
    %c0_i32 = arith.constant 0 : i32
    %c0_i32_0 = arith.constant 0 : i32
    %c0_i32_1 = arith.constant 0 : i32
    return %c0_i32, %c0_i32_0 : i32, i32
  }
  func.func @transform_7(%arg0: i32) -> (i32, i32) {
    %c0_i32 = arith.constant 0 : i32
    %c0_i32_0 = arith.constant 0 : i32
    %c0_i32_1 = arith.constant 0 : i32
    return %c0_i32, %c0_i32_0 : i32, i32
  }
  func.func @transform_8(%arg0: i32) -> (i32, i32) {
    %c0_i32 = arith.constant 0 : i32
    %c0_i32_0 = arith.constant 0 : i32
    %c0_i32_1 = arith.constant 0 : i32
    return %c0_i32, %c0_i32_0 : i32, i32
  }
  func.func @transform_9(%arg0: i32) -> (i32, i32) {
    %c0_i32 = arith.constant 0 : i32
    %c0_i32_0 = arith.constant 0 : i32
    %c0_i32_1 = arith.constant 0 : i32
    return %c0_i32, %c0_i32_0 : i32, i32
  }
  func.func @transform_10(%arg0: i32) -> (i32, i32) {
    %c0_i32 = arith.constant 0 : i32
    %c0_i32_0 = arith.constant 0 : i32
    %c0_i32_1 = arith.constant 0 : i32
    return %c0_i32, %c0_i32_0 : i32, i32
  }
  func.func @transform_11(%arg0: i32) -> (i32, i32) {
    %c0_i32 = arith.constant 0 : i32
    %c0_i32_0 = arith.constant 0 : i32
    %c0_i32_1 = arith.constant 0 : i32
    return %c0_i32, %c0_i32_0 : i32, i32
  }
  func.func @transform_12(%arg0: i32) -> (i32, i32) {
    %c0_i32 = arith.constant 0 : i32
    %c0_i32_0 = arith.constant 0 : i32
    %c0_i32_1 = arith.constant 0 : i32
    return %c0_i32, %c0_i32_0 : i32, i32
  }
  func.func @transform_13(%arg0: i32) -> (i32, i32) {
    %c0_i32 = arith.constant 0 : i32
    %c0_i32_0 = arith.constant 0 : i32
    %c0_i32_1 = arith.constant 0 : i32
    return %c0_i32, %c0_i32_0 : i32, i32
  }
  func.func @transform_14(%arg0: i32) -> (i32, i32) {
    %c0_i32 = arith.constant 0 : i32
    %c0_i32_0 = arith.constant 0 : i32
    %c0_i32_1 = arith.constant 0 : i32
    return %c0_i32, %c0_i32_0 : i32, i32
  }
  func.func @transform_15(%arg0: i32) -> (i32, i32) {
    %c0_i32 = arith.constant 0 : i32
    %c0_i32_0 = arith.constant 0 : i32
    return %arg0, %c0_i32 : i32, i32
  }
}

</mosaic_0001>

<bundles_post_ra>
// kernel: tpu_custom_call.1
= control target key start
LH: loop header
LB: loop body
LE: loop exit
PB: predicated region body
PF: predicated region fallthrough
CT: control target
= control target key end

     0   :  { %s2643_s0 = inlined_call_operand.vmem [shape: f32[16,256], index: 0, kind: input, shape index: {}]   ;;  %s2644_s1 = inlined_call_operand.vmem [shape: f32[256,128], index: 1, kind: input, shape index: {}]   ;;  %s2645_s2 = inlined_call_operand.vmem [shape: f32[1,128], index: 2, kind: input, shape index: {}]   ;;  %s2646_s3 = inlined_call_operand.vmem [shape: f32[128,64], index: 3, kind: input, shape index: {}]   ;;  %s2647_s4 = inlined_call_operand.vmem [shape: f32[1,64], index: 4, kind: input, shape index: {}]   ;;  %s2648_s5 = inlined_call_operand.hbm [shape: f32[64,64], index: 5, kind: input, shape index: {}]   ;;  %s2649_s6 = inlined_call_operand.hbm [shape: f32[1,64], index: 6, kind: input, shape index: {}]   ;;  %s2650_s7 = inlined_call_operand.hbm [shape: f32[64,64], index: 7, kind: input, shape index: {}]   ;;  %s2651_s8 = inlined_call_operand.hbm [shape: f32[1,64], index: 8, kind: input, shape index: {}]   ;;  %s2652_s9 = inlined_call_operand.vmem [shape: f32[64,32], index: 9, kind: input, shape index: {}]   ;;  %s2653_s10 = inlined_call_operand.vmem [shape: f32[1,32], index: 10, kind: input, shape index: {}]   ;;  %s2654_s11 = inlined_call_operand.hbm [shape: f32[32,32], index: 11, kind: input, shape index: {}]   ;;  %s2655_s12 = inlined_call_operand.vmem [shape: f32[1,32], index: 12, kind: input, shape index: {}]   ;;  %s2656_s13 = inlined_call_operand.hbm [shape: f32[32,128], index: 13, kind: input, shape index: {}]   ;;  %s2657_s14 = inlined_call_operand.vmem [shape: f32[1,128], index: 14, kind: input, shape index: {}]   ;;  %s2658_s15 = inlined_call_operand.hbm [shape: f32[16,128], index: 15, kind: output, shape index: {}]  }
   0x1   :  { %2672 = sst [smem:[#allocation27_spill]] %s2649_s6 }
   0x2   :  { %2673 = sst [smem:[#allocation28_spill]] %s2651_s8 }
   0x3   :  { %2674 = sst [smem:[#allocation29_spill]] %s2655_s12 }
   0x4   :  { %2675 = sst [smem:[#allocation30_spill]] %s2657_s14 }
   0x5   :  { %2676 = sst [smem:[#allocation31_spill]] %s2658_s15 }
   0x6   :  { %20 = vsyncpa [#allocation3], 0 }
   0x7   :  { %21 = vsyncpa [#allocation6], 0 }
   0x8   :  { %22 = vsyncpa [#allocation9], 0 }
   0x9   :  { %23 = vsyncpa [#allocation12], 0 }
   0xa   :  { %24 = vsyncpa [#allocation4], 0 }
   0xb   :  { %26 = vsyncpa [#allocation4 + $0x1], 0  ;;  %s2143_s18 = smov 0   ;;  %s2145_s19 = smov 0  }
   0xc   :  { %s2147_s20 = smov 0   ;;  %s2149_s21 = smov 0  }
   0xd LB: > { %2677 = sst [smem:[#allocation19_spill]] %s2037_s18  ;;  %s2164_s22 = sadd.s32 4294967295, %s2049_s21   ;;  %s2049_s21 = sphi %s2149_s21, %s2711_s21   ;;  %s2045_s20 = sphi %s2147_s20, %s2714_s20   ;;  %s2041_s19 = sphi %s2145_s19, %s2713_s19   ;;  %s2037_s18 = sphi %s2143_s18, %s2712_s18  }
   0xe   : > { %2678 = sst [smem:[#allocation20_spill]] %s2041_s19  ;;  %s1355_s23 = sadd.s32 4294967294, %s2049_s21  }
   0xf   : > { %2679 = sst [smem:[#allocation21_spill]] %s2045_s20  ;;  %s2168_s24 = sadd.s32 1, %s2049_s21  }
  0x10   : > { %2680 = sst [smem:[#allocation22_spill]] %s2049_s21  ;;  %s359_s25 = sadd.s32 1, %s2045_s20 }
  0x11   : > { %2681 = sst [smem:[#allocation23_spill]] %s2168_s24  ;;  %s356_s26 = ssub.s32 %s2049_s21, %s2168_s24 }
  0x12   : > { %p369_p0 = scmp.ne.s32.totalorder %s2045_s20, %s2041_s19  ;;  %p357_p1 = scmp.eq.s32.totalorder %s356_s26, 0 }
  0x13   : > { %p370_p2 = scmp.eq.s32.totalorder %s2164_s22, 1  ;;  %p375_p3 = scmp.ne.s32.totalorder %s2041_s19, %s2037_s18 }
  0x14   : > { %p376_p4 = scmp.eq.s32.totalorder %s1355_s23, 1  ;;  %p1356_p7 = scmp.ge.s32.totalorder %s2049_s21, 1 }
  0x15   : > { %s2179_s27 = scalar_select %p357_p1, %s2045_s20, %s359_s25  }
  0x16   : > { %p2181_p5 = por %p370_p2, %p369_p0  ;;  %p2185_p6 = por %p376_p4, %p375_p3 }
  0x17   : > { %2682 = sst [smem:[#allocation24_spill]] %s2179_s27  ;;  %p383_p8 = scmp.lt.s32.totalorder %s2049_s21, 3 }
  0x18   : > { %s2683_s28 = scalar_select %p2181_p5, 1, 0 }
  0x19   : > { %s2685_s29 = scalar_select %p2185_p6, 1, 0 }
  0x1a   : > { %2684 = sst [smem:[#allocation25_spill]] %s2683_s28  ;;  %p2666_p9 = scmp.eq.s32.totalorder %s2164_s22, 0 }
  0x1b   : > { %2686 = sst [smem:[#allocation26_spill]] %s2685_s29  ;;  %p2192_p10 = pnand %p1356_p7, %p383_p8 }
  0x1c   : > { %s2051_s16 = smov [#allocation5]   ;;  %s2052_s23 = smov [#allocation8]  }
  0x1d   : > { %s2687_s30 = scalar_select %p2192_p10, 1, 0 }
  0x1e   : > { %s421_s17 = sshll.u32 %s2051_s16, 4  ;;  %p1724_p11 = pneg %p2192_p10  ;;  %s422_s17 = int_to_ptr.vmem [resolvable:$true] %s421_s17 }
  0x1f   : > { %s445_s25 = sshll.u32 %s2052_s23, 4  ;;  %s2053_s27 = smov [#allocation2]   ;;  %s2204_s25 = int_to_ptr.vmem [resolvable:$true] %s445_s25 }
  0x20   : > { %p2200_p12 = pnand %p2666_p9, %p1724_p11  ;;  %s407_s20 = sshll.u32 %s2053_s27, 4  ;;  %s2206_s20 = int_to_ptr.vmem [resolvable:$true] %s407_s20 }
  0x21   : > { %s2689_s6 = sld [smem:[#allocation27_spill]] }
  0x22   : > { %p2216_p0 = pneg %p2200_p12 }
  0x27   : > { %s1803_s16 = scalar_lea.hbm %s2689_s6, 16 }
  0x28   : > { %p1804_p13 = scmp.ne.s32.totalorder %s2689_s6, %s1803_s16  ;;  %p1810_p3 = scmp.lt.u32.totalorder %s1803_s16, %s2689_s6 }
  0x2a   : > { %p1806_p1 = pnand %p2216_p0, %p1804_p13 }
  0x2c   : > { %p1807_p2 = pneg %p1806_p1 }
  0x2e   : > { %p1812_p4 = pnand %p1810_p3, %p1807_p2 }
  0x30   : > { %1815 = shalt.err (!%p1812_p4)
}
  0x31   : > { %s1816_s24 = scalar_lea.vmem %s422_s17, 16  ;;  %s1823_s18 = scalar_lea.vmem %s422_s17, 32 }
  0x32   : > { %p1817_p7 = scmp.ne.s32.totalorder %s422_s17, %s1816_s24  ;;  %p1824_p9 = scmp.lt.s32.totalorder %s422_s17, %s422_s17 }
  0x33   : > { %p1825_p6 = scmp.lt.s32.totalorder %s1823_s18, %s1816_s24 }
  0x34   : > { %p1819_p8 = pnand %p1817_p7, %p2216_p0 }
  0x35   : > { %p1826_p5 = por %p1825_p6, %p1824_p9 }
  0x36   : > { %p1820_p11 = pneg %p1819_p8 }
  0x38   : > { %p1827_p10 = pnand %p1826_p5, %p1820_p11 }
  0x3a   : > { %1830 = shalt.err (!%p1827_p10)
}
  0x3b   : > { %1730 = dma.hbm_to_vmem [thread:$0]  (!%p2200_p12), %s2689_s6, 16, %s422_s17, [#allocation6]  }
  0x3c   : > { %s2691_s8 = sld [smem:[#allocation28_spill]] }
  0x42   : > { %s1831_s27 = scalar_lea.hbm %s2691_s8, 16 }
  0x43   : > { %p1832_p13 = scmp.ne.s32.totalorder %s2691_s8, %s1831_s27  ;;  %p1838_p5 = scmp.lt.u32.totalorder %s1831_s27, %s2691_s8 }
  0x45   : > { %p1834_p1 = pnand %p1832_p13, %p2216_p0 }
  0x47   : > { %p1835_p6 = pneg %p1834_p1 }
  0x49   : > { %p1840_p9 = pnand %p1838_p5, %p1835_p6 }
  0x4b   : > { %1843 = shalt.err (!%p1840_p9)
}
  0x4c   : > { %s1844_s17 = scalar_lea.vmem %s2204_s25, 16  ;;  %s1851_s14 = scalar_lea.vmem %s2204_s25, 32 }
  0x4d   : > { %p1845_p10 = scmp.ne.s32.totalorder %s2204_s25, %s1844_s17  ;;  %p1852_p4 = scmp.lt.s32.totalorder %s2204_s25, %s2204_s25 }
  0x4e   : > { %p1853_p7 = scmp.lt.s32.totalorder %s1851_s14, %s1844_s17 }
  0x4f   : > { %p1847_p2 = pnand %p1845_p10, %p2216_p0 }
  0x50   : > { %p1854_p8 = por %p1853_p7, %p1852_p4 }
  0x51   : > { %p1848_p3 = pneg %p1847_p2 }
  0x53   : > { %p1855_p11 = pnand %p1854_p8, %p1848_p3 }
  0x55   : > { %1858 = shalt.err (!%p1855_p11)
}
  0x56   : > { %1736 = dma.hbm_to_vmem [thread:$0]  (!%p2200_p12), %s2691_s8, 16, %s2204_s25, [#allocation9]  }
  0x57   : > { %s1859_s16 = scalar_lea.hbm %s2648_s5, 1024 }
  0x58   : > { %p1860_p13 = scmp.ne.s32.totalorder %s2648_s5, %s1859_s16  ;;  %p1866_p5 = scmp.lt.u32.totalorder %s1859_s16, %s2648_s5 }
  0x5a   : > { %p1862_p1 = pnand %p1860_p13, %p2216_p0 }
  0x5c   : > { %p1863_p6 = pneg %p1862_p1 }
  0x5e   : > { %p1868_p9 = pnand %p1866_p5, %p1863_p6 }
  0x60   : > { %1871 = shalt.err (!%p1868_p9)
}
  0x61   : > { %s1872_s25 = scalar_lea.vmem %s2206_s20, 1024  ;;  %p1880_p4 = scmp.lt.s32.totalorder %s2206_s20, %s2206_s20 }
  0x62   : > { %p1873_p10 = scmp.ne.s32.totalorder %s2206_s20, %s1872_s25  ;;  %p1881_p7 = scmp.lt.s32.totalorder %s1872_s25, %s1872_s25 }
  0x64   : > { %p1875_p2 = pnand %p1873_p10, %p2216_p0  ;;  %p1882_p8 = por %p1881_p7, %p1880_p4 }
  0x66   : > { %p1876_p3 = pneg %p1875_p2 }
  0x68   : > { %p1883_p11 = pnand %p1882_p8, %p1876_p3 }
  0x6a   : > { %1886 = shalt.err (!%p1883_p11)
}
  0x6b   : > { %s2054_s14 = smov 128   ;;  %s2055_s28 = smov 8  }
  0x6c   : > { %1727 = dma.hbm_to_vmem [thread:$0]  (!%p2200_p12), %s2648_s5, 1024, %s2206_s20, [#allocation3], %s2054_s14, %s2054_s14, %s2055_s28  }
  0x6d   : > { %s2056_s15 = smov [#allocation7]   ;;  %s2057_s27 = smov [#allocation10]  }
  0x6e   : > { %s431_s16 = sshll.u32 %s2056_s15, 4  ;;  %s461_s24 = sshll.u32 %s2057_s27, 4  ;;  %s432_s16 = int_to_ptr.vmem [resolvable:$true] %s431_s16  ;;  %s462_s24 = int_to_ptr.vmem [resolvable:$true] %s461_s24 }
  0x6f   : > { %s1887_s25 = scalar_lea.hbm %s2650_s7, 1024 }
  0x70   : > { %p1888_p13 = scmp.ne.s32.totalorder %s2650_s7, %s1887_s25  ;;  %p1894_p5 = scmp.lt.u32.totalorder %s1887_s25, %s2650_s7 }
  0x72   : > { %p1890_p1 = pnand %p1888_p13, %p2216_p0 }
  0x74   : > { %p1891_p6 = pneg %p1890_p1 }
  0x76   : > { %p1896_p9 = pnand %p1894_p5, %p1891_p6 }
  0x78   : > { %1899 = shalt.err (!%p1896_p9)
}
  0x79   : > { %s1900_s20 = scalar_lea.vmem %s432_s16, 1024  ;;  %p1908_p4 = scmp.lt.s32.totalorder %s432_s16, %s432_s16 }
  0x7a   : > { %p1901_p10 = scmp.ne.s32.totalorder %s432_s16, %s1900_s20  ;;  %p1909_p7 = scmp.lt.s32.totalorder %s1900_s20, %s1900_s20 }
  0x7c   : > { %p1903_p2 = pnand %p1901_p10, %p2216_p0  ;;  %p1910_p8 = por %p1909_p7, %p1908_p4 }
  0x7e   : > { %p1904_p3 = pneg %p1903_p2 }
  0x80   : > { %p1911_p11 = pnand %p1910_p8, %p1904_p3 }
  0x82   : > { %1914 = shalt.err (!%p1911_p11)
}
  0x83   : > { %1733 = dma.hbm_to_vmem [thread:$0]  (!%p2200_p12), %s2650_s7, 1024, %s432_s16, [#allocation6], %s2054_s14, %s2054_s14, %s2055_s28  }
  0x84   : > { %s1915_s21 = scalar_lea.hbm %s2654_s11, 512 }
  0x85   : > { %p1916_p13 = scmp.ne.s32.totalorder %s2654_s11, %s1915_s21  ;;  %p1922_p5 = scmp.lt.u32.totalorder %s1915_s21, %s2654_s11 }
  0x87   : > { %p1918_p1 = pnand %p1916_p13, %p2216_p0 }
  0x89   : > { %p1919_p6 = pneg %p1918_p1 }
  0x8b   : > { %p1924_p9 = pnand %p1922_p5, %p1919_p6 }
  0x8d   : > { %1927 = shalt.err (!%p1924_p9)
}
  0x8e   : > { %s1928_s17 = scalar_lea.vmem %s462_s24, 512  ;;  %p1936_p4 = scmp.lt.s32.totalorder %s462_s24, %s462_s24 }
  0x8f   : > { %p1929_p10 = scmp.ne.s32.totalorder %s462_s24, %s1928_s17  ;;  %p1937_p7 = scmp.lt.s32.totalorder %s1928_s17, %s1928_s17 }
  0x91   : > { %p1931_p2 = pnand %p1929_p10, %p2216_p0  ;;  %p1938_p8 = por %p1937_p7, %p1936_p4 }
  0x93   : > { %p1932_p3 = pneg %p1931_p2 }
  0x95   : > { %p1939_p11 = pnand %p1938_p8, %p1932_p3 }
  0x97   : > { %1942 = shalt.err (!%p1939_p11)
}
  0x98   : > { %1739 = dma.hbm_to_vmem [thread:$0]  (!%p2200_p12), %s2654_s11, 512, %s462_s24, [#allocation9], %s2054_s14, %s2054_s14, %s2055_s28  }
  0x99   : > { %s2058_s20 = smov [#allocation11]   ;;  %s1943_s19 = scalar_lea.hbm %s2656_s13, 512 }
  0x9a   : > { %s477_s6 = sshll.u32 %s2058_s20, 4  ;;  %p1944_p13 = scmp.ne.s32.totalorder %s2656_s13, %s1943_s19  ;;  %s478_s6 = int_to_ptr.vmem [resolvable:$true] %s477_s6 }
  0x9b   : > { %p1950_p5 = scmp.lt.u32.totalorder %s1943_s19, %s2656_s13 }
  0x9c   : > { %p1946_p1 = pnand %p1944_p13, %p2216_p0 }
  0x9e   : > { %p1947_p6 = pneg %p1946_p1 }
  0xa0   : > { %p1952_p9 = pnand %p1950_p5, %p1947_p6 }
  0xa2   : > { %1955 = shalt.err (!%p1952_p9)
}
  0xa3   : > { %s1956_s24 = scalar_lea.vmem %s478_s6, 512  ;;  %p1964_p4 = scmp.lt.s32.totalorder %s478_s6, %s478_s6 }
  0xa4   : > { %p1957_p10 = scmp.ne.s32.totalorder %s478_s6, %s1956_s24  ;;  %p1965_p7 = scmp.lt.s32.totalorder %s1956_s24, %s1956_s24 }
  0xa6   : > { %p1959_p2 = pnand %p1957_p10, %p2216_p0  ;;  %p1966_p8 = por %p1965_p7, %p1964_p4 }
  0xa8   : > { %p1960_p3 = pneg %p1959_p2 }
  0xaa   : > { %p1967_p11 = pnand %p1966_p8, %p1960_p3 }
  0xac   : > { %1970 = shalt.err (!%p1967_p11)
}
  0xad   : > { %1742 = dma.hbm_to_vmem [thread:$0]  (!%p2200_p12), %s2656_s13, 512, %s478_s6, [#allocation12], %s2054_s14, %s2054_s14, %s2055_s28  }
  0xae   : > { %p2692_p13 = scmp.ne.s32.totalorder %s2687_s30, 0 }
  0xaf   : > { %p2693_p0 = scmp.eq.s32.totalorder (!%p2692_p13), %s2164_s22, 0 }
  0xb0   : > { %504 = sbr.rel (%p2692_p13) target bundleno = 1755 (0x6db), region = 80 }
  0xb7   : > { %2016 = dma.done.wait (%p2693_p0), [#allocation3], 1024   ;;  %p2694_p1 = pmov %p2693_p0 }
  0xb8   : > { %p2695_p6 = pmov %p2693_p0 }
  0xb9   : > { %2018 = vsyncadd (%p2694_p1), [#allocation3], 4294966272 }
  0xba   : > { %2020 = dma.done.wait (%p2695_p6), [#allocation6], 1040   ;;  %p2696_p5 = pmov %p2693_p0 }
  0xbb   : > { %p2697_p9 = pmov %p2693_p0 }
  0xbc   : > { %2022 = vsyncadd (%p2696_p5), [#allocation6], 4294966256 }
  0xbd   : > { %2024 = dma.done.wait (%p2697_p9), [#allocation9], 528   ;;  %p2698_p12 = pmov %p2693_p0 }
  0xbe   : > { %p2699_p10 = pmov %p2693_p0 }
  0xbf   : > { %2026 = vsyncadd (%p2698_p12), [#allocation9], 4294966768 }
  0xc0   : > { %2028 = dma.done.wait (%p2699_p10), [#allocation12], 512   ;;  %p2700_p2 = pmov %p2693_p0 }
  0xc1   : > { %v2059_v0 = vmov 0.0|0.0   ;;  %p572_p3 = scmp.lt.s32.totalorder %s2164_s22, 1  ;;  %v595_v1 = vld [vmem:[%s2644_s1 + $0x80] sm:$0xff]  ;;  %v596_v2 = vld [vmem:[%s2644_s1 + $0x88] sm:$0xff]  ;;  %v597_v6 = vld [vmem:[%s2644_s1 + $0x90] sm:$0xff]  ;;  %vm2060_vm0 = vmmov 0  }
  0xc2   : > { %2030 = vsyncadd (%p2700_p2), [#allocation12], 4294966784  ;;  %1626 = vmatprep.subr.bf16.mxu1 %v2059_v0  ;;  %v579_v3 = vld [vmem:[%s2644_s1] sm:$0xff]  ;;  %v1594_v4 = vpack.c.bf16 %v596_v2, %v595_v1  ;;  %v580_v5 = vld [vmem:[%s2644_s1 + $0x8] sm:$0xff]  ;;  %vm798_vm1 = vcmask 523264   ;;  %vm1062_vm2 = vcmask 261120  }
  0xc3   : > { %s573_s25 = scalar_select %p572_p3, %s2164_s22, 1  ;;  %v598_v7 = vld [vmem:[%s2644_s1 + $0x98] sm:$0xff]  ;;  %v1596_v8 = vpack.c.bf16 %v580_v5, %v579_v3  ;;  %v581_v10 = vld [vmem:[%s2644_s1 + $0x10] sm:$0xff]  ;;  %v599_v12 = vld [vmem:[%s2644_s1 + $0xa0] sm:$0xff] }
  0xc4   : > { %v1598_v9 = vpack.c.bf16 %v598_v7, %v597_v6  ;;  %v582_v11 = vld [vmem:[%s2644_s1 + $0x18] sm:$0xff]  ;;  %1595 = vmatprep.subr.bf16.mxu0 %v1594_v4  ;;  %v600_v13 = vld [vmem:[%s2644_s1 + $0xa8] sm:$0xff]  ;;  %v583_v16 = vld [vmem:[%s2644_s1 + $0x20] sm:$0xff]  ;;  %s2701_s21 = sld [smem:[#allocation20_spill]]  ;;  %s2702_s27 = sld [smem:[#allocation29_spill]] }
  0xc5   : > { %1597 = vmatpush3.bf16.msra.mxu0 %v1596_v8  ;;  %v1600_v14 = vpack.c.bf16 %v582_v11, %v581_v10  ;;  %s1390_s23 = sshll.u32 %s573_s25, 4  ;;  %v1602_v15 = vpack.c.bf16 %v600_v13, %v599_v12  ;;  %v584_v17 = vld [vmem:[%s2644_s1 + $0x28] sm:$0xff]  ;;  %v601_v18 = vld [vmem:[%s2644_s1 + $0xb0] sm:$0xff]  ;;  %v602_v19 = vld [vmem:[%s2644_s1 + $0xb8] sm:$0xff]  ;;  %v2061_v12 = vmov 0.0   ;;  %s2703_s24 = sld [smem:[#allocation25_spill]] }
  0xc6   : > { %1599 = vmatprep.subr.bf16.mxu0 %v1598_v9  ;;  %s2411_s29 = scalar_lea.vmem %s2643_s0, %s1390_s23  ;;  %v1604_v20 = vpack.c.bf16 %v584_v17, %v583_v16  ;;  %v1606_v21 = vpack.c.bf16 %v602_v19, %v601_v18  ;;  %v585_v22 = vld [vmem:[%s2644_s1 + $0x30] sm:$0xff]  ;;  %v586_v23 = vld [vmem:[%s2644_s1 + $0x38] sm:$0xff]  ;;  %v603_v24 = vld [vmem:[%s2644_s1 + $0xc0] sm:$0xff]  ;;  %1512 = vmatprep.mubr.msk.f32.mxu1 %vm2060_vm0, %v2061_v12  ;;  %s2704_s23 = sld [smem:[#allocation30_spill]] }
  0xc7   : > { %v604_v25 = vld [vmem:[%s2644_s1 + $0xc8] sm:$0xff]  ;;  %v689_v27 = vld [vmem:[%s2646_s3] sm:$0xff]  ;;  %v1608_v29 = vpack.c.bf16 %v586_v23, %v585_v22  ;;  %v691_v31 = vld [vmem:[%s2646_s3 + $0x10] sm:$0xff]  ;;  %s1387_s14 = sshll.u32 %s2164_s22, 7  ;;  %s2705_s6 = sld [smem:[#allocation31_spill]] }
  0xc8   : > { %v578_v26 = vld [vmem:[%s2411_s29 + $0x8] sm:$0xff]  ;;  %v692_v32 = vld [vmem:[%s2646_s3 + $0x18] sm:$0xff]  ;;  %v1610_v33 = vpack.c.bf16 %v604_v25, %v603_v24  ;;  %v587_v34 = vld [vmem:[%s2644_s1 + $0x40] sm:$0xff]  ;;  %s2062_s22 = smov [#allocation13]  }
  0xc9   : > { %1601 = vmatpush3.bf16.msra.mxu0 %v1600_v14  ;;  %682 = vmatprep.mubr.f32.mxu0 %v578_v26  ;;  %v690_v28 = vld [vmem:[%s2646_s3 + $0x8] sm:$0xff]  ;;  %v605_v36 = vld [vmem:[%s2644_s1 + $0xd0] sm:$0xff]  ;;  %v606_v37 = vld [vmem:[%s2644_s1 + $0xd8] sm:$0xff]  ;;  %v1630_v38 = vpack.c.bf16 %v692_v32, %v691_v31 }
  0xca   : > { %1603 = vmatprep.subr.bf16.mxu0 %v1602_v15  ;;  %v1627_v30 = vpack.c.bf16 %v690_v28, %v689_v27  ;;  %v588_v35 = vld [vmem:[%s2644_s1 + $0x48] sm:$0xff]  ;;  %v693_v39 = vld [vmem:[%s2646_s3 + $0x20] sm:$0xff]  ;;  %v1614_v42 = vpack.c.bf16 %v606_v37, %v605_v36  ;;  %v589_v43 = vld [vmem:[%s2644_s1 + $0x50] sm:$0xff]  ;;  %s569_s18 = sand.u32 1, %s2701_s21   ;;  %s1975_s21 = sshll.u32 %s2062_s22, 4  ;;  %s1976_s21 = int_to_ptr.vmem [resolvable:$false] %s1975_s21 }
  0xcb   : > { %v694_v40 = vld [vmem:[%s2646_s3 + $0x28] sm:$0xff]  ;;  %v1612_v41 = vpack.c.bf16 %v588_v35, %v587_v34  ;;  %v590_v44 = vld [vmem:[%s2644_s1 + $0x58] sm:$0xff]  ;;  %v607_v45 = vld [vmem:[%s2644_s1 + $0xe0] sm:$0xff]  ;;  %s1371_s17 = sshll.u32 %s569_s18, 3  ;;  %s1223_s12 = scalar_lea.sflag [#allocation4], %s569_s18 }
  0xcc   : > { %1628 = vmatpush3.bf16.msra.mxu1 %v1627_v30  ;;  %v608_v46 = vld [vmem:[%s2644_s1 + $0xe8] sm:$0xff]  ;;  %v1633_v47 = vpack.c.bf16 %v694_v40, %v693_v39  ;;  %v695_v48 = vld [vmem:[%s2646_s3 + $0x30] sm:$0xff]  ;;  %v696_v49 = vld [vmem:[%s2646_s3 + $0x38] sm:$0xff]  ;;  %v1616_v50 = vpack.c.bf16 %v590_v44, %v589_v43  ;;  %s571_s28 = scalar_lea.vmem [#allocation13], %s1371_s17  ;;  %p2706_p7 = scmp.ne.s32.totalorder %s2703_s24, 0 }
  0xcd   : > { %1605 = vmatpush3.bf16.msra.mxu0 %v1604_v20  ;;  %1629 = vmatprep.subr.bf16.mxu1 %v2059_v0  ;;  %v1618_v51 = vpack.c.bf16 %v608_v46, %v607_v45  ;;  %v591_v52 = vld [vmem:[%s2644_s1 + $0x60] sm:$0xff]  ;;  %v592_v53 = vld [vmem:[%s2644_s1 + $0x68] sm:$0xff]  ;;  %v609_v54 = vld [vmem:[%s2644_s1 + $0xf0] sm:$0xff]  ;;  %v1636_v56 = vpack.c.bf16 %v696_v49, %v695_v48  ;;  %s1236_s16 = sshll.u32 %s571_s28, 4  ;;  %s2601_s8 = scalar_lea.hbm %s2705_s6, %s1387_s14  ;;  %s2603_s16 = int_to_ptr.vmem [resolvable:$true] %s1236_s16 }
  0xce   : > { %1607 = vmatprep.subr.bf16.mxu0 %v1606_v21  ;;  %v610_v55 = vld [vmem:[%s2644_s1 + $0xf8] sm:$0xff]  ;;  %v697_v57 = vld [vmem:[%s2646_s3 + $0x40] sm:$0xff]  ;;  %v698_v58 = vld [vmem:[%s2646_s3 + $0x48] sm:$0xff]  ;;  %v1620_v59 = vpack.c.bf16 %v592_v53, %v591_v52  ;;  %s1971_s19 = scalar_lea.vmem %s2603_s16, 128  ;;  %s1977_s25 = scalar_lea.vmem %s1976_s21, 256 }
  0xcf   : > { %v1622_v60 = vpack.c.bf16 %v610_v55, %v609_v54  ;;  %v593_v61 = vld [vmem:[%s2644_s1 + $0x70] sm:$0xff]  ;;  %v594_v62 = vld [vmem:[%s2644_s1 + $0x78] sm:$0xff]  ;;  %v1639_v63 = vpack.c.bf16 %v698_v58, %v697_v57  ;;  %v577_v5 = vld [vmem:[%s2411_s29] sm:$0xff]  ;;  %p1972_p4 = scmp.ne.s32.totalorder %s2603_s16, %s1971_s19  ;;  %p1978_p13 = scmp.lt.s32.totalorder %s2603_s16, %s1976_s21 }
  0xd0   : > { %1631 = vmatpush3.bf16.msra.mxu1 %v1630_v38  ;;  %v699_v1 = vld [vmem:[%s2646_s3 + $0x50] sm:$0xff]  ;;  %v700_v2 = vld [vmem:[%s2646_s3 + $0x58] sm:$0xff]  ;;  %v1624_v3 = vpack.c.bf16 %v594_v62, %v593_v61  ;;  %v701_v6 = vld [vmem:[%s2646_s3 + $0x60] sm:$0xff]  ;;  %p1979_p0 = scmp.lt.s32.totalorder %s1977_s25, %s1971_s19 }
  0xd1   : > { %1609 = vmatpush3.bf16.msra.mxu0 %v1608_v29  ;;  %1632 = vmatprep.subr.bf16.mxu1 %v2059_v0  ;;  %v1642_v4 = vpack.c.bf16 %v700_v2, %v699_v1  ;;  %v702_v7 = vld [vmem:[%s2646_s3 + $0x68] sm:$0xff]  ;;  %v703_v9 = vld [vmem:[%s2646_s3 + $0x70] sm:$0xff]  ;;  %v704_v10 = vld [vmem:[%s2646_s3 + $0x78] sm:$0xff]  ;;  %p1973_p8 = pnand %p1972_p4, %p2706_p7 }
  0xd2   : > { %1611 = vmatprep.subr.bf16.mxu0 %v1610_v33  ;;  %v1645_v8 = vpack.c.bf16 %v702_v7, %v701_v6  ;;  %v1648_v11 = vpack.c.bf16 %v704_v10, %v703_v9  ;;  %v783_v13 = vld [vmem:[#allocation2] sm:$0xff]  ;;  %v784_v14 = vld [vmem:[#allocation2 + $0x8] sm:$0xff]  ;;  %v785_v15 = vld [vmem:[#allocation2 + $0x10] sm:$0xff]  ;;  %p1980_p1 = por %p1979_p0, %p1978_p13 }
  0xd3   : > { %v1651_v16 = vpack.c.bf16 %v784_v14, %v783_v13  ;;  %v786_v17 = vld [vmem:[#allocation2 + $0x18] sm:$0xff]  ;;  %v787_v19 = vld [vmem:[#allocation2 + $0x20] sm:$0xff]  ;;  %v788_v20 = vld [vmem:[#allocation2 + $0x28] sm:$0xff]  ;;  %p1974_p11 = pneg %p1973_p8 }
  0xd4   : > { %1634 = vmatpush3.bf16.msra.mxu1 %v1633_v47  ;;  %v1654_v18 = vpack.c.bf16 %v786_v17, %v785_v15  ;;  %v1657_v21 = vpack.c.bf16 %v788_v20, %v787_v19  ;;  %v1374_v23 = vld [vmem:[%s2645_s2] ss:$0 sm:$0xff]  ;;  %v789_v28 = vld [vmem:[#allocation2 + $0x30] sm:$0xff]  ;;  %v790_v29 = vld [vmem:[#allocation2 + $0x38] sm:$0xff] }
  0xd5   : > { %1613 = vmatpush3.bf16.msra.mxu0 %v1612_v41  ;;  %1635 = vmatprep.subr.bf16.mxu1 %v2059_v0  ;;  %v1660_v30 = vpack.c.bf16 %v790_v29, %v789_v28  ;;  %v873_v31 = vld [vmem:[#allocation7] sm:$0xff]  ;;  %v874_v32 = vld [vmem:[#allocation7 + $0x8] sm:$0xff]  ;;  %v875_v33 = vld [vmem:[#allocation7 + $0x10] sm:$0xff]  ;;  %p1981_p6 = pnand %p1980_p1, %p1974_p11 }
  0xd6   : > { %1615 = vmatprep.subr.bf16.mxu0 %v1614_v42  ;;  %v1663_v34 = vpack.c.bf16 %v874_v32, %v873_v31  ;;  %v876_v35 = vld [vmem:[#allocation7 + $0x18] sm:$0xff]  ;;  %v877_v37 = vld [vmem:[#allocation7 + $0x20] sm:$0xff]  ;;  %v878_v38 = vld [vmem:[#allocation7 + $0x28] sm:$0xff] }
  0xd7   : > { %v1666_v36 = vpack.c.bf16 %v876_v35, %v875_v33  ;;  %v1669_v39 = vpack.c.bf16 %v878_v38, %v877_v37  ;;  %v1375_v40 = vld [vmem:[%s2647_s4] ss:$0 sm:$0xff]  ;;  %v879_v45 = vld [vmem:[#allocation7 + $0x30] sm:$0xff]  ;;  %v963_v49 = vld [vmem:[%s2652_s9 + $0x8] sm:$0xff] }
  0xd8   : > { %1637 = vmatpush3.bf16.msra.mxu1 %v1636_v56  ;;  %v880_v46 = vld [vmem:[#allocation7 + $0x38] sm:$0xff]  ;;  %v967_v55 = vld [vmem:[%s2652_s9 + $0x28] sm:$0xff]  ;;  %v968_v62 = vld [vmem:[%s2652_s9 + $0x30] sm:$0xff] }
  0xd9   : > { %1617 = vmatpush3.bf16.msra.mxu0 %v1616_v50  ;;  %1638 = vmatprep.subr.bf16.mxu1 %v2059_v0  ;;  %v1672_v47 = vpack.c.bf16 %v880_v46, %v879_v45  ;;  %v962_v48 = vld [vmem:[%s2652_s9] sm:$0xff]  ;;  %v964_v50 = vld [vmem:[%s2652_s9 + $0x10] sm:$0xff]  ;;  %v965_v52 = vld [vmem:[%s2652_s9 + $0x18] sm:$0xff] }
  0xda   : > { %1619 = vmatprep.subr.bf16.mxu0 %v1618_v51  ;;  %v1675_v51 = vpack.c.bf16 %v963_v49, %v962_v48  ;;  %v1678_v53 = vpack.c.bf16 %v965_v52, %v964_v50  ;;  %v966_v54 = vld [vmem:[%s2652_s9 + $0x20] sm:$0xff]  ;;  %v1053_v10 = vld [vmem:[#allocation10 + $0x10] sm:$0xff] }
  0xdb   : > { %v1681_v56 = vpack.c.bf16 %v967_v55, %v966_v54  ;;  %v1376_v57 = vld [vmem:[#allocation5] ss:$0 sm:$0xff]  ;;  %v1051_v2 = vld [vmem:[#allocation10] sm:$0xff] }
  0xdc   : > { %1640 = vmatpush3.bf16.msra.mxu1 %v1639_v63  ;;  %v969_v63 = vld [vmem:[%s2652_s9 + $0x38] sm:$0xff]  ;;  %v1380_v14 = vld [vmem:[%s2653_s10] ss:$0 sm:$0xff]  ;;  %v1137_v15 = vld [vmem:[#allocation11] sm:$0xff] }
  0xdd   : > { %1621 = vmatpush3.bf16.msra.mxu0 %v1620_v59  ;;  %1641 = vmatprep.subr.bf16.mxu1 %v2059_v0  ;;  %v1684_v1 = vpack.c.bf16 %v969_v63, %v968_v62 }
  0xde   : > { %1623 = vmatprep.subr.bf16.mxu0 %v1622_v60 }
  0xe0   : > { %1643 = vmatpush3.bf16.msra.mxu1 %v1642_v4 }
  0xe1   : > { %1625 = vmatpush3.bf16.msra.mxu0 %v1624_v3  ;;  %1644 = vmatprep.subr.bf16.mxu1 %v2059_v0  ;;  %v1052_v3 = vld [vmem:[#allocation10 + $0x8] sm:$0xff] }
  0xe2   : > { %1650 = vmatprep.subr.bf16.mxu0 %v2059_v0  ;;  %v1687_v4 = vpack.c.bf16 %v1052_v3, %v1051_v2 }
  0xe4   : > { %683 = vmatmul.mubr.f32.vlgmr.msra.gmra.mrb[0].mxu0 %v577_v5  ;;  %1646 = vmatpush3.bf16.msra.mxu1 %v1645_v8  ;;  %v1378_v5 = vld [vmem:[#allocation8] ss:$0 sm:$0xff] }
  0xe5   : > { %1647 = vmatprep.subr.bf16.mxu1 %v2059_v0  ;;  %1531 = vmatprep.mubr.msk.f32.mxu0 %vm2060_vm0, %v2061_v12 }
  0xe6   : > { %1652 = vmatpush3.bf16.msra.mxu0 %v1651_v16  ;;  %v1138_v16 = vld [vmem:[#allocation11 + $0x8] sm:$0xff] }
  0xe7   : > { %1653 = vmatprep.subr.bf16.mxu0 %v2059_v0  ;;  %v1693_v20 = vpack.c.bf16 %v1138_v16, %v1137_v15 }
  0xe8   : > { %1649 = vmatpush3.bf16.msra.mxu1 %v1648_v11  ;;  %v1054_v11 = vld [vmem:[#allocation10 + $0x18] sm:$0xff] }
  0xe9   : > { %1662 = vmatprep.subr.bf16.mxu1 %v2059_v0  ;;  %v1690_v13 = vpack.c.bf16 %v1054_v11, %v1053_v10 }
  0xea   : > { %1655 = vmatpush3.bf16.msra.mxu0 %v1654_v18 }
  0xeb   : > { %1656 = vmatprep.subr.bf16.mxu0 %v2059_v0 }
  0xee   : > { %1658 = vmatpush3.bf16.msra.mxu0 %v1657_v21 }
  0xef   : > { %1659 = vmatprep.subr.bf16.mxu0 %v2059_v0 }
  0xf2   : > { %1661 = vmatpush3.bf16.msra.mxu0 %v1660_v30 }
  0xf3   : > { %1674 = vmatprep.subr.bf16.mxu0 %v2059_v0 }
 0x1b7   : > { %v1423_v22 = vpop.f32.mrb[0].mxu0 }
 0x1b8   : > { %v1424_v24 = vpop.f32.mrb[1].mxu0 }
 0x1b9   : > { %v1425_v25 = vadd.f32 %v1424_v24, %v1423_v22  ;;  %v1139_v22 = vld [vmem:[#allocation11 + $0x10] sm:$0xff] }
 0x1bb   : > { %v685_v26 = vadd.f32 %v1425_v25, %v1374_v23  ;;  %v1140_v23 = vld [vmem:[#allocation11 + $0x18] sm:$0xff] }
 0x1bc   : > { %v1696_v24 = vpack.c.bf16 %v1140_v23, %v1139_v22  ;;  %v1382_v25 = vld [vmem:[%s2702_s27] ss:$0 sm:$0xff] }
 0x1bd   : > { %v688_v27 = vmax.f32 %v685_v26, 0.0 }
 0x1bf   : > { %1513 = vmatmul.mubr.f32.vlgmr.msra.gmra.mrb[0].mxu1 %v688_v27 }
 0x1c0   : > { %1550 = vmatprep.mubr.msk.f32.mxu1 %vm2060_vm0, %v2061_v12  ;;  %1664 = vmatpush3.bf16.msra.mxu1 %v1663_v34 }
 0x1c1   : > { %1665 = vmatprep.subr.bf16.mxu1 %v2059_v0 }
 0x1c4   : > { %1667 = vmatpush3.bf16.msra.mxu1 %v1666_v36 }
 0x1c5   : > { %1668 = vmatprep.subr.bf16.mxu1 %v2059_v0 }
 0x1c8   : > { %1670 = vmatpush3.bf16.msra.mxu1 %v1669_v39 }
 0x1c9   : > { %1671 = vmatprep.subr.bf16.mxu1 %v2059_v0 }
 0x1cc   : > { %1673 = vmatpush3.bf16.msra.mxu1 %v1672_v47 }
 0x1cd   : > { %1686 = vmatprep.subr.bf16.mxu1 %v2059_v0 }
 0x292   : > { %v778_v41 = vpop.f32.mrb[0].mxu1 }
 0x293   : > { %v779_v42 = vadd.f32 %v1375_v40, %v778_v41  ;;  %v1514_v43 = vpop.f32.mrb[1].mxu1 }
 0x295   : > { %v782_v44 = vmax.f32 %v779_v42, 0.0 }
 0x297   : > { %1532 = vmatmul.mubr.msk.f32.vlgmr.msra.gmra.mrb[2].mxu0 %vm798_vm1, %v782_v44 }
 0x298   : > { %1569 = vmatprep.mubr.msk.f32.mxu0 %vm2060_vm0, %v2061_v12  ;;  %1676 = vmatpush3.bf16.msra.mxu0 %v1675_v51 }
 0x299   : > { %1677 = vmatprep.subr.bf16.mxu0 %v2059_v0 }
 0x29c   : > { %1679 = vmatpush3.bf16.msra.mxu0 %v1678_v53 }
 0x29d   : > { %1680 = vmatprep.subr.bf16.mxu0 %v2059_v0 }
 0x2a0   : > { %1682 = vmatpush3.bf16.msra.mxu0 %v1681_v56 }
 0x2a1   : > { %1683 = vmatprep.subr.bf16.mxu0 %v2059_v0 }
 0x2a4   : > { %1685 = vmatpush3.bf16.msra.mxu0 %v1684_v1 }
 0x36a   : > { %v868_v58 = vpop.f32.mrb[2].mxu0 }
 0x36b   : > { %v869_v59 = vadd.f32 %v1376_v57, %v868_v58  ;;  %v1533_v60 = vpop.f32.mrb[3].mxu0 }
 0x36d   : > { %v872_v61 = vmax.f32 %v869_v59, 0.0 }
 0x36f   : > { %1551 = vmatmul.mubr.msk.f32.vlgmr.msra.gmra.mrb[2].mxu1 %vm798_vm1, %v872_v61 }
 0x370   : > { %1580 = vmatprep.mubr.msk.f32.mxu1 %vm2060_vm0, %v2061_v12  ;;  %1688 = vmatpush3.bf16.msra.mxu1 %v1687_v4 }
 0x371   : > { %1689 = vmatprep.subr.bf16.mxu1 %v2059_v0 }
 0x374   : > { %1691 = vmatpush3.bf16.msra.mxu1 %v1690_v13 }
 0x375   : > { %1692 = vmatprep.subr.bf16.mxu1 %v2059_v0 }
 0x442   : > { %v957_v6 = vpop.f32.mrb[2].mxu1 }
 0x443   : > { %v958_v7 = vadd.f32 %v1378_v5, %v957_v6  ;;  %v1552_v8 = vpop.f32.mrb[3].mxu1 }
 0x445   : > { %v961_v9 = vmax.f32 %v958_v7, 0.0 }
 0x447   : > { %1570 = vmatmul.mubr.msk.f32.vlgmr.msra.gmra.mrb[4].mxu0 %vm798_vm1, %v961_v9 }
 0x51a   : > { %v1046_v17 = vpop.f32.mrb[4].mxu0 }
 0x51b   : > { %v1047_v18 = vadd.f32 %v1380_v14, %v1046_v17  ;;  %v1571_v19 = vpop.f32.mrb[5].mxu0 }
 0x51d   : > { %v1050_v21 = vmax.f32 %v1047_v18, 0.0 }
 0x51f   : > { %1581 = vmatmul.mubr.msk.f32.vlgmr.msra.gmra.mrb[4].mxu1 %vm1062_vm2, %v1050_v21 }
 0x520   : > { %1694 = vmatpush3.bf16.msra.mxu1 %v1693_v20  ;;  %1591 = vmatprep.mubr.msk.f32.mxu1 %vm2060_vm0, %v2061_v12 }
 0x521   : > { %1695 = vmatprep.subr.bf16.mxu1 %v2059_v0  ;;  %v1384_v0 = vld [vmem:[%s2704_s23] ss:$0 sm:$0xff] }
 0x524   : > { %1697 = vmatpush3.bf16.msra.mxu1 %v1696_v24 }
 0x5f2   : > { %v1132_v26 = vpop.f32.mrb[4].mxu1 }
 0x5f3   : > { %v1133_v27 = vadd.f32 %v1382_v25, %v1132_v26  ;;  %v1582_v28 = vpop.f32.mrb[5].mxu1 }
 0x5f5   : > { %v1136_v29 = vmax.f32 %v1133_v27, 0.0 }
 0x5f7   : > { %1592 = vmatmul.mubr.msk.f32.vlgmr.msra.gmra.mrb[6].mxu1 %vm1062_vm2, %v1136_v29 }
 0x6ca   : > { %v1217_v12 = vpop.f32.mrb[6].mxu1 }
 0x6cb   : > { %v1218_v30 = vadd.f32 %v1384_v0, %v1217_v12  ;;  %v1593_v31 = vpop.f32.mrb[7].mxu1 }
 0x6cd   : > { %1221 = vst [vmem:[%s571_s28] sm:$0xff] %v1218_v30 }
 0x6ce   : > { %1984 = shalt.err (!%p1981_p6)
}
 0x6cf   : > { %s1985_s15 = scalar_lea.hbm %s2601_s8, 128  ;;  %s1989_s17 = scalar_lea.hbm %s2705_s6, 256 }
 0x6d0   : > { %p1986_p5 = scmp.ne.s32.totalorder %s2601_s8, %s1985_s15  ;;  %p1990_p10 = scmp.lt.u32.totalorder %s2601_s8, %s2705_s6 }
 0x6d1   : > { %p1991_p2 = scmp.lt.u32.totalorder %s1989_s17, %s1985_s15  ;;  %p1993_p4 = scmp.lt.u32.totalorder %s1985_s15, %s2601_s8 }
 0x6d2   : > { %p1987_p9 = pnand %p1986_p5, %p2706_p7 }
 0x6d3   : > { %p1992_p3 = por %p1991_p2, %p1990_p10 }
 0x6d4   : > { %p1988_p12 = pneg %p1987_p9 }
 0x6d5   : > { %p1994_p8 = por %p1993_p4, %p1992_p3 }
 0x6d7   : > { %p1995_p11 = pnand %p1994_p8, %p1988_p12 }
 0x6d9   : > { %1998 = shalt.err (!%p1995_p11)
}
 0x6da   : > { %1722 = dma.vmem_to_hbm [thread:$0]  (%p2706_p7), %s2603_s16, 128, %s2601_s8, %s1223_s12  }
 0x6db PF: > { %s2707_s23 = sld [smem:[#allocation22_spill]]  ;;  %s2708_s14 = sld [smem:[#allocation19_spill]] }
 0x6dc   : > { %s2709_s28 = sld [smem:[#allocation26_spill]] }
 0x6e1   : > { %p1759_p13 = scmp.ge.s32.totalorder %s2707_s23, 2  ;;  %s1248_s29 = sand.u32 1, %s2708_s14  }
 0x6e2   : > { %p2710_p0 = scmp.ne.s32.totalorder %s2709_s28, 0  ;;  %s1249_s20 = scalar_lea.sflag [#allocation4], %s1248_s29 }
 0x6e4   : > { %p1744_p1 = pnand %p1759_p13, %p2710_p0 }
 0x6e6   : > { %2032 = dma.done.wait (!%p1744_p1), %s1249_s20, 128  }
 0x6e7   : > { %2034 = vsyncadd (!%p1744_p1), %s1249_s20, 4294967168  ;;  %s2711_s21 = sld [smem:[#allocation23_spill]]  ;;  %s2712_s18 = sld [smem:[#allocation20_spill]] }
 0x6e8   : > { %s2713_s19 = sld [smem:[#allocation21_spill]]  ;;  %s2714_s20 = sld [smem:[#allocation24_spill]] }
 0x6ed   : > { %p29_p6 = scmp.ge.s32.totalorder %s2711_s21, 4  }
 0x6ef   :  { %31 = sbr.rel (!%p29_p6) target bundleno = 13 (0xd), region = 140 }
 0x6f6   :  { %1254 = vsyncpa [#allocation3], 1 }
 0x6f7   :  { %1256 = vsyncpa [#allocation3 + $0x1], 1 }
 0x6f8   :  { %1257 = vsyncpa [#allocation6], 1 }
 0x6f9   :  { %1258 = vsyncpa [#allocation9], 1 }
 0x6fa   :  { %1259 = vsyncpa [#allocation12], 1 }
 0x6fb   :  { %1260 = vsyncpa [#allocation4], 1 }
 0x6fc   :  { %1262 = vsyncpa [#allocation4 + $0x1], 1 }

</bundles_post_ra>
